<compile_context>
chip_gen: v5e
topology: v5e:2x2
jax: 0.10.0
libtpu: 0.0.40
codegen_flags: <defaults>
</compile_context>

<pallas_src>
import jax
import jax.numpy as jnp
from jax.experimental import pallas as pl
from jax.experimental.pallas import tpu as pltpu

LEAKY_SLOPE = 0.2
BN_EPS = 1e-3


# --------------------------------------------------------------------------
# Fused basic-block Pallas kernel
# --------------------------------------------------------------------------
def _make_basic_block_kernel(has_shortcut):
    def kernel(x_ref, s1_ref, t1_ref, a1_ref, b1_ref, c1b_ref,
               s2_ref, t2_ref, a2_ref, b2_ref, c2b_ref, *rest):
        if has_shortcut:
            bs_ref, scb_ref, o_ref = rest
        else:
            (o_ref,) = rest

        x = x_ref[0]                                   # (H, W*Cin) f32, lane-dense

        # ---- BN1 (folded eval-mode affine) + LeakyReLU(0.2), f32 VPU math ----
        h = x * s1_ref[...] + t1_ref[...]
        h = jnp.where(h >= 0, h, LEAKY_SLOPE * h)
        hb = h.astype(jnp.bfloat16)

        # ---- conv1: 3x3, pad=1, stride folded into A1/B1 ---------------------
        acc1 = None
        for kh in range(3):
            rows = jnp.dot(a1_ref[kh], hb, preferred_element_type=jnp.float32)
            term = jnp.dot(rows.astype(jnp.bfloat16), b1_ref[kh],
                           preferred_element_type=jnp.float32)
            acc1 = term if acc1 is None else acc1 + term
        x1 = acc1 + c1b_ref[...]                       # (Ho, Wo*Cm)

        # ---- BN2 + LeakyReLU --------------------------------------------------
        h2 = x1 * s2_ref[...] + t2_ref[...]
        h2 = jnp.where(h2 >= 0, h2, LEAKY_SLOPE * h2)
        h2b = h2.astype(jnp.bfloat16)

        # ---- conv2: 3x3, pad=1, stride 1 --------------------------------------
        acc2 = None
        for kh in range(3):
            rows = jnp.dot(a2_ref[kh], h2b, preferred_element_type=jnp.float32)
            term = jnp.dot(rows.astype(jnp.bfloat16), b2_ref[kh],
                           preferred_element_type=jnp.float32)
            acc2 = term if acc2 is None else acc2 + term
        x2 = acc2 + c2b_ref[...]                       # (Ho, Wo*Cm)

        # ---- shortcut (1x1 conv, stride folded) + residual add ---------------
        if has_shortcut:
            xb = x.astype(jnp.bfloat16)
            # a1_ref[1] == stride row-selector (row-shift of the middle tap = I)
            rows = jnp.dot(a1_ref[1], xb, preferred_element_type=jnp.float32)
            y0 = jnp.dot(rows.astype(jnp.bfloat16), bs_ref[...],
                         preferred_element_type=jnp.float32)
            out = y0 + scb_ref[...] + x2
        else:
            out = x + x2

        o_ref[0] = out

    return kernel


# --------------------------------------------------------------------------
# Wrapper: builds the folded operator matrices and the pallas_call
# --------------------------------------------------------------------------
def basic_block_forward(x, p):
    """x: (N, H, W, Cin) NHWC float32 -> (N, Ho, Wo, Cm)."""
    N, H, W, Cin = x.shape
    c1, c2 = p['conv1'], p['residual']
    Cm = c1['w'].shape[-1]
    s = p['subsample']
    sc = p['shortcut']
    has_shortcut = sc is not None
    Ho = (H - 1) // s + 1
    Wo = (W - 1) // s + 1
    f32, bf16 = jnp.float32, jnp.bfloat16

    # folded eval-mode BN affine (tiled to the lane-dense layout)
    inv1 = c1['gamma'] * jax.lax.rsqrt(c1['var'] + BN_EPS)
    sh1 = c1['beta'] - c1['mean'] * inv1
    inv2 = c2['gamma'] * jax.lax.rsqrt(c2['var'] + BN_EPS)
    sh2 = c2['beta'] - c2['mean'] * inv2

    scale1 = jnp.tile(inv1, W).reshape(1, W * Cin)
    shift1 = jnp.tile(sh1, W).reshape(1, W * Cin)
    scale2 = jnp.tile(inv2, Wo).reshape(1, Wo * Cm)
    shift2 = jnp.tile(sh2, Wo).reshape(1, Wo * Cm)
    bias1 = jnp.tile(c1['b'], Wo).reshape(1, Wo * Cm)
    bias2 = jnp.tile(c2['b'], Wo).reshape(1, Wo * Cm)

    # stride selection operators
    srow = jax.nn.one_hot(jnp.arange(Ho) * s, H, dtype=f32)          # (Ho, H)
    pcol = jax.nn.one_hot(jnp.arange(Wo) * s, W, dtype=f32).T        # (W, Wo)
    scol = jnp.kron(pcol, jnp.eye(Cm, dtype=f32))                    # (W*Cm, Wo*Cm)

    # 3x3 conv as  out = sum_kh A[kh] @ act @ B[kh]  (padding + stride folded)
    A1 = jnp.stack([srow @ jnp.eye(H, k=kh - 1, dtype=f32)
                    for kh in range(3)]).astype(bf16)                # (3, Ho, H)
    B1 = jnp.stack([
        sum(jnp.kron(jnp.eye(W, k=-(kw - 1), dtype=f32), c1['w'][kh, kw])
            for kw in range(3)) @ scol
        for kh in range(3)]).astype(bf16)                            # (3, W*Cin, Wo*Cm)
    A2 = jnp.stack([jnp.eye(Ho, k=kh - 1, dtype=f32)
                    for kh in range(3)]).astype(bf16)                # (3, Ho, Ho)
    B2 = jnp.stack([
        sum(jnp.kron(jnp.eye(Wo, k=-(kw - 1), dtype=f32), c2['w'][kh, kw])
            for kw in range(3))
        for kh in range(3)]).astype(bf16)                            # (3, Wo*Cm, Wo*Cm)

    inputs = [x.reshape(N, H, W * Cin), scale1, shift1, A1, B1, bias1,
              scale2, shift2, A2, B2, bias2]
    in_specs = [
        pl.BlockSpec((1, H, W * Cin), lambda n: (n, 0, 0)),
        pl.BlockSpec((1, W * Cin), lambda n: (0, 0)),
        pl.BlockSpec((1, W * Cin), lambda n: (0, 0)),
        pl.BlockSpec((3, Ho, H), lambda n: (0, 0, 0)),
        pl.BlockSpec((3, W * Cin, Wo * Cm), lambda n: (0, 0, 0)),
        pl.BlockSpec((1, Wo * Cm), lambda n: (0, 0)),
        pl.BlockSpec((1, Wo * Cm), lambda n: (0, 0)),
        pl.BlockSpec((1, Wo * Cm), lambda n: (0, 0)),
        pl.BlockSpec((3, Ho, Ho), lambda n: (0, 0, 0)),
        pl.BlockSpec((3, Wo * Cm, Wo * Cm), lambda n: (0, 0, 0)),
        pl.BlockSpec((1, Wo * Cm), lambda n: (0, 0)),
    ]
    if has_shortcut:
        BS = jnp.kron(pcol, sc['w']).astype(bf16)                    # (W*Cin, Wo*Cm)
        biass = jnp.tile(sc['b'], Wo).reshape(1, Wo * Cm)
        inputs += [BS, biass]
        in_specs += [pl.BlockSpec((W * Cin, Wo * Cm), lambda n: (0, 0)),
                     pl.BlockSpec((1, Wo * Cm), lambda n: (0, 0))]

    out = pl.pallas_call(
        _make_basic_block_kernel(has_shortcut),
        out_shape=jax.ShapeDtypeStruct((N, Ho, Wo * Cm), f32),
        grid=(N,),
        in_specs=in_specs,
        out_specs=pl.BlockSpec((1, Ho, Wo * Cm), lambda n: (n, 0, 0)),
        compiler_params=pltpu.CompilerParams(
            dimension_semantics=("parallel",)),
    )(*inputs)
    return out.reshape(N, Ho, Wo, Cm)


def residual_block_forward(x_nhwc, params):
    for p in params:
        x_nhwc = basic_block_forward(x_nhwc, p)
    return x_nhwc


# --------------------------------------------------------------------------
# Parameter init (deterministic, synthetic)
# --------------------------------------------------------------------------
def init_bn_relu_conv_params(key, cin, cout, fw=3, fh=3):
    k = jax.random.split(key, 6)
    return dict(
        gamma=jax.random.uniform(k[0], (cin,), jnp.float32, 0.5, 1.5),
        beta=0.1 * jax.random.normal(k[1], (cin,), jnp.float32),
        mean=0.1 * jax.random.normal(k[2], (cin,), jnp.float32),
        var=jax.random.uniform(k[3], (cin,), jnp.float32, 0.5, 1.5),
        w=0.1 * jax.random.normal(k[4], (fw, fh, cin, cout), jnp.float32),
        b=0.1 * jax.random.normal(k[5], (cout,), jnp.float32),
    )


def init_basic_block_params(key, in_f, nb_f, init_subsample):
    k = jax.random.split(key, 4)
    p = dict(subsample=init_subsample,
             conv1=init_bn_relu_conv_params(k[0], in_f, nb_f),
             residual=init_bn_relu_conv_params(k[1], nb_f, nb_f),
             shortcut=None)
    if in_f != nb_f or init_subsample != 1:
        p['shortcut'] = dict(
            w=0.1 * jax.random.normal(k[2], (in_f, nb_f), jnp.float32),
            b=0.1 * jax.random.normal(k[3], (nb_f,), jnp.float32))
    return p


def init_residual_block_params(key, in_filters, nb_filters, repetitions,
                               is_first_layer=False):
    keys = jax.random.split(key, repetitions)
    blocks = []
    for i in range(repetitions):
        init_subsample = 1
        if i == repetitions - 1 and not is_first_layer:
            init_subsample = 2
        cin = in_filters if i == 0 else nb_filters
        blocks.append(
            init_basic_block_params(keys[i], cin, nb_filters, init_subsample))
    return blocks


# --------------------------------------------------------------------------
# Pure-JAX references (matched bf16-MXU precision and full f32)
# --------------------------------------------------------------------------
def _ref_bn_relu_conv(x, c, stride, bf16_mxu):
    inv = c['gamma'] / jnp.sqrt(c['var'] + BN_EPS)
    a = x * inv + (c['beta'] - c['mean'] * inv)
    a = jnp.where(a >= 0, a, LEAKY_SLOPE * a)
    w = c['w']
    if bf16_mxu:
        a, w = a.astype(jnp.bfloat16), w.astype(jnp.bfloat16)
        prec = None
    else:
        prec = jax.lax.Precision.HIGHEST
    y = jax.lax.conv_general_dilated(
        a, w, (stride, stride), ((1, 1), (1, 1)),
        dimension_numbers=('NHWC', 'HWIO', 'NHWC'),
        preferred_element_type=jnp.float32, precision=prec)
    return y + c['b']


def _ref_basic_block(x, p, bf16_mxu):
    s = p['subsample']
    x1 = _ref_bn_relu_conv(x, p['conv1'], s, bf16_mxu)
    x2 = _ref_bn_relu_conv(x1, p['residual'], 1, bf16_mxu)
    if p['shortcut'] is not None:
        xs = x[:, ::s, ::s, :]
        w = p['shortcut']['w']
        if bf16_mxu:
            xs, w = xs.astype(jnp.bfloat16), w.astype(jnp.bfloat16)
            prec = None
        else:
            prec = jax.lax.Precision.HIGHEST
        y0 = jnp.einsum('nhwc,cd->nhwd', xs, w,
                        preferred_element_type=jnp.float32, precision=prec)
        return y0 + p['shortcut']['b'] + x2
    return x + x2


def _ref_residual_block(x, params, bf16_mxu):
    for p in params:
        x = _ref_basic_block(x, p, bf16_mxu)
    return x


# --------------------------------------------------------------------------
if __name__ == "__main__":
    key = jax.random.PRNGKey(0)
    k_x, k_p = jax.random.split(key)

    # PyTorch-style NCHW input: batch=2, in_filters=4, 16x16 spatial
    x_nchw = jax.random.normal(k_x, (2, 4, 16, 16), jnp.float32)
    x_nhwc = jnp.transpose(x_nchw, (0, 2, 3, 1))

    # _residual_block(in_filters=4, nb_filters=8, repetitions=2, is_first_layer=False)
    params = init_residual_block_params(k_p, in_filters=4, nb_filters=8,
                                        repetitions=2, is_first_layer=False)

    out_nhwc = jax.block_until_ready(residual_block_forward(x_nhwc, params))
    out_nchw = jnp.transpose(out_nhwc, (0, 3, 1, 2))
    assert out_nchw.shape == (2, 8, 8, 8), out_nchw.shape

    # matched-precision reference (bf16 MXU operands, f32 accumulation)
    ref_bf16 = _ref_residual_block(x_nhwc, params, bf16_mxu=True)
    err_bf16 = float(jnp.max(jnp.abs(out_nhwc - ref_bf16)))
    assert err_bf16 < 5e-3, err_bf16

    # sanity check against the full-f32 module semantics
    ref_f32 = _ref_residual_block(x_nhwc, params, bf16_mxu=False)
    err_f32 = float(jnp.max(jnp.abs(out_nhwc - ref_f32)))
    assert err_f32 < 5e-2, err_f32

    print("KERNEL_OK")
</pallas_src>

<mosaic_0001>
module attributes {stable_mosaic.version = 11 : i64} {
  func.func @kernel(%arg0: i32, %arg1: memref<1x16x64xf32, #tpu.memory_space<vmem>>, %arg2: memref<1x64xf32, #tpu.memory_space<vmem>>, %arg3: memref<1x64xf32, #tpu.memory_space<vmem>>, %arg4: memref<3x16x16xbf16, #tpu.memory_space<vmem>>, %arg5: memref<3x64x128xbf16, #tpu.memory_space<vmem>>, %arg6: memref<1x128xf32, #tpu.memory_space<vmem>>, %arg7: memref<1x128xf32, #tpu.memory_space<vmem>>, %arg8: memref<1x128xf32, #tpu.memory_space<vmem>>, %arg9: memref<3x16x16xbf16, #tpu.memory_space<vmem>>, %arg10: memref<3x128x128xbf16, #tpu.memory_space<vmem>>, %arg11: memref<1x128xf32, #tpu.memory_space<vmem>>, %arg12: memref<64x128xbf16, #tpu.memory_space<vmem>>, %arg13: memref<1x128xf32, #tpu.memory_space<vmem>>, %arg14: memref<1x16x128xf32, #tpu.memory_space<vmem>>) attributes {dimension_semantics = [#tpu.dimension_semantics<parallel>], iteration_bounds = array<i64: 2>, scalar_prefetch = 0 : i64, scratch_operands = 0 : i64, tpu.core_type = #tpu.core_type<tc>, window_params = [{transform_indices = @transform_0, window_bounds = array<i64: 1, 16, 64>}, {pipeline_mode = #tpu.pipeline_mode<synchronous>, transform_indices = @transform_1, window_bounds = array<i64: 1, 64>}, {pipeline_mode = #tpu.pipeline_mode<synchronous>, transform_indices = @transform_2, window_bounds = array<i64: 1, 64>}, {pipeline_mode = #tpu.pipeline_mode<synchronous>, transform_indices = @transform_3, window_bounds = array<i64: 3, 16, 16>}, {pipeline_mode = #tpu.pipeline_mode<synchronous>, transform_indices = @transform_4, window_bounds = array<i64: 3, 64, 128>}, {pipeline_mode = #tpu.pipeline_mode<synchronous>, transform_indices = @transform_5, window_bounds = array<i64: 1, 128>}, {pipeline_mode = #tpu.pipeline_mode<synchronous>, transform_indices = @transform_6, window_bounds = array<i64: 1, 128>}, {pipeline_mode = #tpu.pipeline_mode<synchronous>, transform_indices = @transform_7, window_bounds = array<i64: 1, 128>}, {pipeline_mode = #tpu.pipeline_mode<synchronous>, transform_indices = @transform_8, window_bounds = array<i64: 3, 16, 16>}, {pipeline_mode = #tpu.pipeline_mode<synchronous>, transform_indices = @transform_9, window_bounds = array<i64: 3, 128, 128>}, {pipeline_mode = #tpu.pipeline_mode<synchronous>, transform_indices = @transform_10, window_bounds = array<i64: 1, 128>}, {pipeline_mode = #tpu.pipeline_mode<synchronous>, transform_indices = @transform_11, window_bounds = array<i64: 64, 128>}, {pipeline_mode = #tpu.pipeline_mode<synchronous>, transform_indices = @transform_12, window_bounds = array<i64: 1, 128>}, {transform_indices = @transform_13, window_bounds = array<i64: 1, 16, 128>}]} {
    %c0 = arith.constant 0 : index
    %c0_0 = arith.constant 0 : index
    %c0_1 = arith.constant 0 : index
    %0 = vector.load %arg1[%c0, %c0_0, %c0_1] : memref<1x16x64xf32, #tpu.memory_space<vmem>>, vector<1x16x64xf32>
    %1 = vector.shape_cast %0 : vector<1x16x64xf32> to vector<16x64xf32>
    %c0_2 = arith.constant 0 : index
    %c0_3 = arith.constant 0 : index
    %2 = vector.load %arg2[%c0_2, %c0_3] : memref<1x64xf32, #tpu.memory_space<vmem>>, vector<1x64xf32>
    %3 = vector.broadcast %2 : vector<1x64xf32> to vector<16x64xf32>
    %4 = arith.mulf %1, %3 : vector<16x64xf32>
    %c0_4 = arith.constant 0 : index
    %c0_5 = arith.constant 0 : index
    %5 = vector.load %arg3[%c0_4, %c0_5] : memref<1x64xf32, #tpu.memory_space<vmem>>, vector<1x64xf32>
    %6 = vector.broadcast %5 : vector<1x64xf32> to vector<16x64xf32>
    %7 = arith.addf %4, %6 : vector<16x64xf32>
    %cst = arith.constant 0.000000e+00 : f32
    %8 = vector.broadcast %cst : f32 to vector<16x64xf32>
    %9 = arith.cmpf oge, %7, %8 : vector<16x64xf32>
    %cst_6 = arith.constant 2.000000e-01 : f32
    %10 = vector.broadcast %cst_6 : f32 to vector<16x64xf32>
    %11 = arith.mulf %10, %7 : vector<16x64xf32>
    %12 = arith.select %9, %7, %11 : vector<16x64xi1>, vector<16x64xf32>
    %13 = arith.truncf %12 : vector<16x64xf32> to vector<16x64xbf16>
    %c0_7 = arith.constant 0 : index
    %c0_8 = arith.constant 0 : index
    %c0_9 = arith.constant 0 : index
    %14 = vector.load %arg4[%c0_7, %c0_8, %c0_9] : memref<3x16x16xbf16, #tpu.memory_space<vmem>>, vector<1x16x16xbf16>
    %15 = vector.shape_cast %14 : vector<1x16x16xbf16> to vector<16x16xbf16>
    %cst_10 = arith.constant dense<0.000000e+00> : vector<16x64xf32>
    %16 = tpu.matmul %15, %13, %cst_10 {dimension_numbers = #tpu.dot_dimension_numbers<[1], [0], [0], [1], [0, 0, 1, 1], [], []>} : vector<16x16xbf16>, vector<16x64xbf16>, vector<16x64xf32> -> vector<16x64xf32>
    %17 = arith.truncf %16 : vector<16x64xf32> to vector<16x64xbf16>
    %c0_11 = arith.constant 0 : index
    %c0_12 = arith.constant 0 : index
    %c0_13 = arith.constant 0 : index
    %18 = vector.load %arg5[%c0_11, %c0_12, %c0_13] : memref<3x64x128xbf16, #tpu.memory_space<vmem>>, vector<1x64x128xbf16>
    %19 = vector.shape_cast %18 : vector<1x64x128xbf16> to vector<64x128xbf16>
    %cst_14 = arith.constant dense<0.000000e+00> : vector<16x128xf32>
    %20 = tpu.matmul %17, %19, %cst_14 {dimension_numbers = #tpu.dot_dimension_numbers<[1], [0], [0], [1], [0, 0, 1, 1], [], []>} : vector<16x64xbf16>, vector<64x128xbf16>, vector<16x128xf32> -> vector<16x128xf32>
    %c1 = arith.constant 1 : index
    %c0_15 = arith.constant 0 : index
    %c0_16 = arith.constant 0 : index
    %21 = vector.load %arg4[%c1, %c0_15, %c0_16] : memref<3x16x16xbf16, #tpu.memory_space<vmem>>, vector<1x16x16xbf16>
    %22 = vector.shape_cast %21 : vector<1x16x16xbf16> to vector<16x16xbf16>
    %cst_17 = arith.constant dense<0.000000e+00> : vector<16x64xf32>
    %23 = tpu.matmul %22, %13, %cst_17 {dimension_numbers = #tpu.dot_dimension_numbers<[1], [0], [0], [1], [0, 0, 1, 1], [], []>} : vector<16x16xbf16>, vector<16x64xbf16>, vector<16x64xf32> -> vector<16x64xf32>
    %24 = arith.truncf %23 : vector<16x64xf32> to vector<16x64xbf16>
    %c1_18 = arith.constant 1 : index
    %c0_19 = arith.constant 0 : index
    %c0_20 = arith.constant 0 : index
    %25 = vector.load %arg5[%c1_18, %c0_19, %c0_20] : memref<3x64x128xbf16, #tpu.memory_space<vmem>>, vector<1x64x128xbf16>
    %26 = vector.shape_cast %25 : vector<1x64x128xbf16> to vector<64x128xbf16>
    %cst_21 = arith.constant dense<0.000000e+00> : vector<16x128xf32>
    %27 = tpu.matmul %24, %26, %cst_21 {dimension_numbers = #tpu.dot_dimension_numbers<[1], [0], [0], [1], [0, 0, 1, 1], [], []>} : vector<16x64xbf16>, vector<64x128xbf16>, vector<16x128xf32> -> vector<16x128xf32>
    %28 = arith.addf %20, %27 : vector<16x128xf32>
    %c2 = arith.constant 2 : index
    %c0_22 = arith.constant 0 : index
    %c0_23 = arith.constant 0 : index
    %29 = vector.load %arg4[%c2, %c0_22, %c0_23] : memref<3x16x16xbf16, #tpu.memory_space<vmem>>, vector<1x16x16xbf16>
    %30 = vector.shape_cast %29 : vector<1x16x16xbf16> to vector<16x16xbf16>
    %cst_24 = arith.constant dense<0.000000e+00> : vector<16x64xf32>
    %31 = tpu.matmul %30, %13, %cst_24 {dimension_numbers = #tpu.dot_dimension_numbers<[1], [0], [0], [1], [0, 0, 1, 1], [], []>} : vector<16x16xbf16>, vector<16x64xbf16>, vector<16x64xf32> -> vector<16x64xf32>
    %32 = arith.truncf %31 : vector<16x64xf32> to vector<16x64xbf16>
    %c2_25 = arith.constant 2 : index
    %c0_26 = arith.constant 0 : index
    %c0_27 = arith.constant 0 : index
    %33 = vector.load %arg5[%c2_25, %c0_26, %c0_27] : memref<3x64x128xbf16, #tpu.memory_space<vmem>>, vector<1x64x128xbf16>
    %34 = vector.shape_cast %33 : vector<1x64x128xbf16> to vector<64x128xbf16>
    %cst_28 = arith.constant dense<0.000000e+00> : vector<16x128xf32>
    %35 = tpu.matmul %32, %34, %cst_28 {dimension_numbers = #tpu.dot_dimension_numbers<[1], [0], [0], [1], [0, 0, 1, 1], [], []>} : vector<16x64xbf16>, vector<64x128xbf16>, vector<16x128xf32> -> vector<16x128xf32>
    %36 = arith.addf %28, %35 : vector<16x128xf32>
    %c0_29 = arith.constant 0 : index
    %c0_30 = arith.constant 0 : index
    %37 = vector.load %arg6[%c0_29, %c0_30] : memref<1x128xf32, #tpu.memory_space<vmem>>, vector<1x128xf32>
    %38 = vector.broadcast %37 : vector<1x128xf32> to vector<16x128xf32>
    %39 = arith.addf %36, %38 : vector<16x128xf32>
    %c0_31 = arith.constant 0 : index
    %c0_32 = arith.constant 0 : index
    %40 = vector.load %arg7[%c0_31, %c0_32] : memref<1x128xf32, #tpu.memory_space<vmem>>, vector<1x128xf32>
    %41 = vector.broadcast %40 : vector<1x128xf32> to vector<16x128xf32>
    %42 = arith.mulf %39, %41 : vector<16x128xf32>
    %c0_33 = arith.constant 0 : index
    %c0_34 = arith.constant 0 : index
    %43 = vector.load %arg8[%c0_33, %c0_34] : memref<1x128xf32, #tpu.memory_space<vmem>>, vector<1x128xf32>
    %44 = vector.broadcast %43 : vector<1x128xf32> to vector<16x128xf32>
    %45 = arith.addf %42, %44 : vector<16x128xf32>
    %cst_35 = arith.constant 0.000000e+00 : f32
    %46 = vector.broadcast %cst_35 : f32 to vector<16x128xf32>
    %47 = arith.cmpf oge, %45, %46 : vector<16x128xf32>
    %cst_36 = arith.constant 2.000000e-01 : f32
    %48 = vector.broadcast %cst_36 : f32 to vector<16x128xf32>
    %49 = arith.mulf %48, %45 : vector<16x128xf32>
    %50 = arith.select %47, %45, %49 : vector<16x128xi1>, vector<16x128xf32>
    %51 = arith.truncf %50 : vector<16x128xf32> to vector<16x128xbf16>
    %c0_37 = arith.constant 0 : index
    %c0_38 = arith.constant 0 : index
    %c0_39 = arith.constant 0 : index
    %52 = vector.load %arg9[%c0_37, %c0_38, %c0_39] : memref<3x16x16xbf16, #tpu.memory_space<vmem>>, vector<1x16x16xbf16>
    %53 = vector.shape_cast %52 : vector<1x16x16xbf16> to vector<16x16xbf16>
    %cst_40 = arith.constant dense<0.000000e+00> : vector<16x128xf32>
    %54 = tpu.matmul %53, %51, %cst_40 {dimension_numbers = #tpu.dot_dimension_numbers<[1], [0], [0], [1], [0, 0, 1, 1], [], []>} : vector<16x16xbf16>, vector<16x128xbf16>, vector<16x128xf32> -> vector<16x128xf32>
    %55 = arith.truncf %54 : vector<16x128xf32> to vector<16x128xbf16>
    %c0_41 = arith.constant 0 : index
    %c0_42 = arith.constant 0 : index
    %c0_43 = arith.constant 0 : index
    %56 = vector.load %arg10[%c0_41, %c0_42, %c0_43] : memref<3x128x128xbf16, #tpu.memory_space<vmem>>, vector<1x128x128xbf16>
    %57 = vector.shape_cast %56 : vector<1x128x128xbf16> to vector<128x128xbf16>
    %cst_44 = arith.constant dense<0.000000e+00> : vector<16x128xf32>
    %58 = tpu.matmul %55, %57, %cst_44 {dimension_numbers = #tpu.dot_dimension_numbers<[1], [0], [0], [1], [0, 0, 1, 1], [], []>} : vector<16x128xbf16>, vector<128x128xbf16>, vector<16x128xf32> -> vector<16x128xf32>
    %c1_45 = arith.constant 1 : index
    %c0_46 = arith.constant 0 : index
    %c0_47 = arith.constant 0 : index
    %59 = vector.load %arg9[%c1_45, %c0_46, %c0_47] : memref<3x16x16xbf16, #tpu.memory_space<vmem>>, vector<1x16x16xbf16>
    %60 = vector.shape_cast %59 : vector<1x16x16xbf16> to vector<16x16xbf16>
    %cst_48 = arith.constant dense<0.000000e+00> : vector<16x128xf32>
    %61 = tpu.matmul %60, %51, %cst_48 {dimension_numbers = #tpu.dot_dimension_numbers<[1], [0], [0], [1], [0, 0, 1, 1], [], []>} : vector<16x16xbf16>, vector<16x128xbf16>, vector<16x128xf32> -> vector<16x128xf32>
    %62 = arith.truncf %61 : vector<16x128xf32> to vector<16x128xbf16>
    %c1_49 = arith.constant 1 : index
    %c0_50 = arith.constant 0 : index
    %c0_51 = arith.constant 0 : index
    %63 = vector.load %arg10[%c1_49, %c0_50, %c0_51] : memref<3x128x128xbf16, #tpu.memory_space<vmem>>, vector<1x128x128xbf16>
    %64 = vector.shape_cast %63 : vector<1x128x128xbf16> to vector<128x128xbf16>
    %cst_52 = arith.constant dense<0.000000e+00> : vector<16x128xf32>
    %65 = tpu.matmul %62, %64, %cst_52 {dimension_numbers = #tpu.dot_dimension_numbers<[1], [0], [0], [1], [0, 0, 1, 1], [], []>} : vector<16x128xbf16>, vector<128x128xbf16>, vector<16x128xf32> -> vector<16x128xf32>
    %66 = arith.addf %58, %65 : vector<16x128xf32>
    %c2_53 = arith.constant 2 : index
    %c0_54 = arith.constant 0 : index
    %c0_55 = arith.constant 0 : index
    %67 = vector.load %arg9[%c2_53, %c0_54, %c0_55] : memref<3x16x16xbf16, #tpu.memory_space<vmem>>, vector<1x16x16xbf16>
    %68 = vector.shape_cast %67 : vector<1x16x16xbf16> to vector<16x16xbf16>
    %cst_56 = arith.constant dense<0.000000e+00> : vector<16x128xf32>
    %69 = tpu.matmul %68, %51, %cst_56 {dimension_numbers = #tpu.dot_dimension_numbers<[1], [0], [0], [1], [0, 0, 1, 1], [], []>} : vector<16x16xbf16>, vector<16x128xbf16>, vector<16x128xf32> -> vector<16x128xf32>
    %70 = arith.truncf %69 : vector<16x128xf32> to vector<16x128xbf16>
    %c2_57 = arith.constant 2 : index
    %c0_58 = arith.constant 0 : index
    %c0_59 = arith.constant 0 : index
    %71 = vector.load %arg10[%c2_57, %c0_58, %c0_59] : memref<3x128x128xbf16, #tpu.memory_space<vmem>>, vector<1x128x128xbf16>
    %72 = vector.shape_cast %71 : vector<1x128x128xbf16> to vector<128x128xbf16>
    %cst_60 = arith.constant dense<0.000000e+00> : vector<16x128xf32>
    %73 = tpu.matmul %70, %72, %cst_60 {dimension_numbers = #tpu.dot_dimension_numbers<[1], [0], [0], [1], [0, 0, 1, 1], [], []>} : vector<16x128xbf16>, vector<128x128xbf16>, vector<16x128xf32> -> vector<16x128xf32>
    %74 = arith.addf %66, %73 : vector<16x128xf32>
    %c0_61 = arith.constant 0 : index
    %c0_62 = arith.constant 0 : index
    %75 = vector.load %arg11[%c0_61, %c0_62] : memref<1x128xf32, #tpu.memory_space<vmem>>, vector<1x128xf32>
    %76 = vector.broadcast %75 : vector<1x128xf32> to vector<16x128xf32>
    %77 = arith.addf %74, %76 : vector<16x128xf32>
    %78 = arith.truncf %1 : vector<16x64xf32> to vector<16x64xbf16>
    %c1_63 = arith.constant 1 : index
    %c0_64 = arith.constant 0 : index
    %c0_65 = arith.constant 0 : index
    %79 = vector.load %arg4[%c1_63, %c0_64, %c0_65] : memref<3x16x16xbf16, #tpu.memory_space<vmem>>, vector<1x16x16xbf16>
    %80 = vector.shape_cast %79 : vector<1x16x16xbf16> to vector<16x16xbf16>
    %cst_66 = arith.constant dense<0.000000e+00> : vector<16x64xf32>
    %81 = tpu.matmul %80, %78, %cst_66 {dimension_numbers = #tpu.dot_dimension_numbers<[1], [0], [0], [1], [0, 0, 1, 1], [], []>} : vector<16x16xbf16>, vector<16x64xbf16>, vector<16x64xf32> -> vector<16x64xf32>
    %82 = arith.truncf %81 : vector<16x64xf32> to vector<16x64xbf16>
    %c0_67 = arith.constant 0 : index
    %c0_68 = arith.constant 0 : index
    %83 = vector.load %arg12[%c0_67, %c0_68] : memref<64x128xbf16, #tpu.memory_space<vmem>>, vector<64x128xbf16>
    %cst_69 = arith.constant dense<0.000000e+00> : vector<16x128xf32>
    %84 = tpu.matmul %82, %83, %cst_69 {dimension_numbers = #tpu.dot_dimension_numbers<[1], [0], [0], [1], [0, 0, 1, 1], [], []>} : vector<16x64xbf16>, vector<64x128xbf16>, vector<16x128xf32> -> vector<16x128xf32>
    %c0_70 = arith.constant 0 : index
    %c0_71 = arith.constant 0 : index
    %85 = vector.load %arg13[%c0_70, %c0_71] : memref<1x128xf32, #tpu.memory_space<vmem>>, vector<1x128xf32>
    %86 = vector.broadcast %85 : vector<1x128xf32> to vector<16x128xf32>
    %87 = arith.addf %84, %86 : vector<16x128xf32>
    %88 = arith.addf %87, %77 : vector<16x128xf32>
    %c0_72 = arith.constant 0 : index
    %c0_73 = arith.constant 0 : index
    %c0_74 = arith.constant 0 : index
    %89 = vector.load %arg14[%c0_72, %c0_73, %c0_74] : memref<1x16x128xf32, #tpu.memory_space<vmem>>, vector<1x16x128xf32>
    %90 = vector.shape_cast %89 : vector<1x16x128xf32> to vector<16x128xf32>
    %91 = vector.shape_cast %88 : vector<16x128xf32> to vector<1x16x128xf32>
    tpu.vector_store %arg14[%c0_72, %c0_73, %c0_74], %91 {strides = array<i32>} : memref<1x16x128xf32, #tpu.memory_space<vmem>>, vector<1x16x128xf32>,
    return
  }
  func.func @transform_0(%arg0: i32) -> (i32, i32, i32) {
    %c0_i32 = arith.constant 0 : i32
    %c0_i32_0 = arith.constant 0 : i32
    %c0_i32_1 = arith.constant 0 : i32
    return %arg0, %c0_i32, %c0_i32_0 : i32, i32, i32
  }
  func.func @transform_1(%arg0: i32) -> (i32, i32) {
    %c0_i32 = arith.constant 0 : i32
    %c0_i32_0 = arith.constant 0 : i32
    %c0_i32_1 = arith.constant 0 : i32
    return %c0_i32, %c0_i32_0 : i32, i32
  }
  func.func @transform_2(%arg0: i32) -> (i32, i32) {
    %c0_i32 = arith.constant 0 : i32
    %c0_i32_0 = arith.constant 0 : i32
    %c0_i32_1 = arith.constant 0 : i32
    return %c0_i32, %c0_i32_0 : i32, i32
  }
  func.func @transform_3(%arg0: i32) -> (i32, i32, i32) {
    %c0_i32 = arith.constant 0 : i32
    %c0_i32_0 = arith.constant 0 : i32
    %c0_i32_1 = arith.constant 0 : i32
    %c0_i32_2 = arith.constant 0 : i32
    return %c0_i32, %c0_i32_0, %c0_i32_1 : i32, i32, i32
  }
  func.func @transform_4(%arg0: i32) -> (i32, i32, i32) {
    %c0_i32 = arith.constant 0 : i32
    %c0_i32_0 = arith.constant 0 : i32
    %c0_i32_1 = arith.constant 0 : i32
    %c0_i32_2 = arith.constant 0 : i32
    return %c0_i32, %c0_i32_0, %c0_i32_1 : i32, i32, i32
  }
  func.func @transform_5(%arg0: i32) -> (i32, i32) {
    %c0_i32 = arith.constant 0 : i32
    %c0_i32_0 = arith.constant 0 : i32
    %c0_i32_1 = arith.constant 0 : i32
    return %c0_i32, %c0_i32_0 : i32, i32
  }
  func.func @transform_6(%arg0: i32) -> (i32, i32) {
    %c0_i32 = arith.constant 0 : i32
    %c0_i32_0 = arith.constant 0 : i32
    %c0_i32_1 = arith.constant 0 : i32
    return %c0_i32, %c0_i32_0 : i32, i32
  }
  func.func @transform_7(%arg0: i32) -> (i32, i32) {
    %c0_i32 = arith.constant 0 : i32
    %c0_i32_0 = arith.constant 0 : i32
    %c0_i32_1 = arith.constant 0 : i32
    return %c0_i32, %c0_i32_0 : i32, i32
  }
  func.func @transform_8(%arg0: i32) -> (i32, i32, i32) {
    %c0_i32 = arith.constant 0 : i32
    %c0_i32_0 = arith.constant 0 : i32
    %c0_i32_1 = arith.constant 0 : i32
    %c0_i32_2 = arith.constant 0 : i32
    return %c0_i32, %c0_i32_0, %c0_i32_1 : i32, i32, i32
  }
  func.func @transform_9(%arg0: i32) -> (i32, i32, i32) {
    %c0_i32 = arith.constant 0 : i32
    %c0_i32_0 = arith.constant 0 : i32
    %c0_i32_1 = arith.constant 0 : i32
    %c0_i32_2 = arith.constant 0 : i32
    return %c0_i32, %c0_i32_0, %c0_i32_1 : i32, i32, i32
  }
  func.func @transform_10(%arg0: i32) -> (i32, i32) {
    %c0_i32 = arith.constant 0 : i32
    %c0_i32_0 = arith.constant 0 : i32
    %c0_i32_1 = arith.constant 0 : i32
    return %c0_i32, %c0_i32_0 : i32, i32
  }
  func.func @transform_11(%arg0: i32) -> (i32, i32) {
    %c0_i32 = arith.constant 0 : i32
    %c0_i32_0 = arith.constant 0 : i32
    %c0_i32_1 = arith.constant 0 : i32
    return %c0_i32, %c0_i32_0 : i32, i32
  }
  func.func @transform_12(%arg0: i32) -> (i32, i32) {
    %c0_i32 = arith.constant 0 : i32
    %c0_i32_0 = arith.constant 0 : i32
    %c0_i32_1 = arith.constant 0 : i32
    return %c0_i32, %c0_i32_0 : i32, i32
  }
  func.func @transform_13(%arg0: i32) -> (i32, i32, i32) {
    %c0_i32 = arith.constant 0 : i32
    %c0_i32_0 = arith.constant 0 : i32
    %c0_i32_1 = arith.constant 0 : i32
    return %arg0, %c0_i32, %c0_i32_0 : i32, i32, i32
  }
}

</mosaic_0001>

<bundles_post_ra>
// kernel: tpu_custom_call.1
= control target key start
LH: loop header
LB: loop body
LE: loop exit
PB: predicated region body
PF: predicated region fallthrough
CT: control target
= control target key end

     0   :  { %s2362_s0 = inlined_call_operand.hbm [shape: f32[2,16,64], index: 0, kind: input, shape index: {}]   ;;  %s2363_s1 = inlined_call_operand.hbm [shape: f32[1,64], index: 1, kind: input, shape index: {}]   ;;  %s2364_s2 = inlined_call_operand.vmem [shape: f32[1,64], index: 2, kind: input, shape index: {}]   ;;  %s2365_s3 = inlined_call_operand.hbm [shape: bf16[3,16,16], index: 3, kind: input, shape index: {}]   ;;  %s2366_s4 = inlined_call_operand.hbm [shape: bf16[3,64,128], index: 4, kind: input, shape index: {}]   ;;  %s2367_s5 = inlined_call_operand.vmem [shape: f32[1,128], index: 5, kind: input, shape index: {}]   ;;  %s2368_s6 = inlined_call_operand.vmem [shape: f32[1,128], index: 6, kind: input, shape index: {}]   ;;  %s2369_s7 = inlined_call_operand.vmem [shape: f32[1,128], index: 7, kind: input, shape index: {}]   ;;  %s2370_s8 = inlined_call_operand.hbm [shape: bf16[3,16,16], index: 8, kind: input, shape index: {}]   ;;  %s2371_s9 = inlined_call_operand.hbm [shape: bf16[3,128,128], index: 9, kind: input, shape index: {}]   ;;  %s2372_s10 = inlined_call_operand.vmem [shape: f32[1,128], index: 10, kind: input, shape index: {}]   ;;  %s2373_s11 = inlined_call_operand.hbm [shape: bf16[64,128], index: 11, kind: input, shape index: {}]   ;;  %s2374_s12 = inlined_call_operand.vmem [shape: f32[1,128], index: 12, kind: input, shape index: {}]   ;;  %s2375_s13 = inlined_call_operand.hbm [shape: f32[2,16,128], index: 13, kind: output, shape index: {}]  }
   0x1   :  { %2377 = sst [smem:[#allocation20_spill]] %s2363_s1 }
   0x2   :  { %2378 = sst [smem:[#allocation21_spill]] %s2365_s3 }
   0x3   :  { %2379 = sst [smem:[#allocation22_spill]] %s2366_s4 }
   0x4   :  { %2380 = sst [smem:[#allocation23_spill]] %s2370_s8 }
   0x5   :  { %2381 = sst [smem:[#allocation24_spill]] %s2371_s9 }
   0x6   :  { %2382 = sst [smem:[#allocation25_spill]] %s2372_s10 }
   0x7   :  { %2383 = sst [smem:[#allocation26_spill]] %s2374_s12 }
   0x8   :  { %2384 = sst [smem:[#allocation27_spill]] %s2375_s13 }
   0x9   :  { %18 = vsyncpa [#allocation3], 0 }
   0xa   :  { %20 = vsyncpa [#allocation3 + $0x1], 0 }
   0xb   :  { %21 = vsyncpa [#allocation6], 0 }
   0xc   :  { %22 = vsyncpa [#allocation9], 0 }
   0xd   :  { %23 = vsyncpa [#allocation12], 0 }
   0xe   :  { %24 = vsyncpa [#allocation4], 0 }
   0xf   :  { %26 = vsyncpa [#allocation4 + $0x1], 0  ;;  %s2136_s25 = smov 0   ;;  %s2138_s26 = smov 0  }
  0x10   :  { %s2140_s27 = smov 0   ;;  %s2142_s28 = smov 0  }
  0x11 LB: > { %s2385_s1 = sld [smem:[#allocation20_spill]]  ;;  %s2160_s15 = sadd.s32 4294967295, %s2052_s28   ;;  %s2052_s28 = sphi %s2142_s28, %s2404_s28   ;;  %s2048_s27 = sphi %s2140_s27, %s2403_s27   ;;  %s2044_s26 = sphi %s2138_s26, %s2402_s26   ;;  %s2040_s25 = sphi %s2136_s25, %s2401_s25  }
  0x12   : > { %p1376_p0 = scmp.ge.s32.totalorder %s2052_s28, 1  ;;  %p53_p1 = scmp.eq.s32.totalorder %s2160_s15, 0 }
  0x13   : > { %p341_p2 = scmp.lt.s32.totalorder %s2052_s28, 3  ;;  %s2054_s17 = smov [#allocation5]  }
  0x14   : > { %s355_s18 = sshll.u32 %s2054_s17, 4  ;;  %s2387_s4 = sld [smem:[#allocation22_spill]]  ;;  %s356_s18 = int_to_ptr.vmem [resolvable:$true] %s355_s18 }
  0x15   : > { %p2165_p3 = pnand %p1376_p0, %p341_p2  ;;  %s2389_s9 = sld [smem:[#allocation24_spill]] }
  0x16   : > { %s2055_s30 = smov [#allocation8]   ;;  %s2056_s19 = smov 64  }
  0x17   : > { %s353_s14 = sshll.u32 %s2385_s1, 4  ;;  %p1672_p5 = pneg %p2165_p3  ;;  %s354_s14 = int_to_ptr.hbm [resolvable:$true] %s353_s14 }
  0x18   : > { %s383_s17 = sshll.u32 %s2055_s30, 4  ;;  %s2057_s20 = smov 4   ;;  %s384_s17 = int_to_ptr.vmem [resolvable:$true] %s383_s17 }
  0x19   : > { %p2177_p6 = pnand %p1672_p5, %p53_p1  ;;  %s2390_s3 = sld [smem:[#allocation21_spill]] }
  0x1a   : > { %s381_s21 = sshll.u32 %s2387_s4, 4  ;;  %s2058_s12 = smov [#allocation11]   ;;  %s382_s21 = int_to_ptr.hbm [resolvable:$true] %s381_s21 }
  0x1b   : > { %s418_s29 = sshll.u32 %s2389_s9, 4  ;;  %s420_s10 = sshll.u32 %s2058_s12, 4  ;;  %s419_s29 = int_to_ptr.hbm [resolvable:$true] %s418_s29  ;;  %s421_s10 = int_to_ptr.vmem [resolvable:$true] %s420_s10 }
  0x1c   : > { %1675 = dma.hbm_to_vmem [thread:$0]  (!%p2177_p6), %s354_s14, 16, %s356_s18, [#allocation6]  }
  0x1d   : > { %1681 = dma.hbm_to_vmem [thread:$0]  (!%p2177_p6), %s382_s21, 1536, %s384_s17, [#allocation9], %s2056_s19, %s2056_s19, %s2057_s20  }
  0x1e   : > { %1687 = dma.hbm_to_vmem [thread:$0]  (!%p2177_p6), %s419_s29, 3072, %s421_s10, [#allocation12], %s2056_s19, %s2056_s19, %s2057_s20  }
  0x1f   : > { %s367_s13 = sshll.u32 %s2390_s3, 4  ;;  %s2059_s14 = smov [#allocation7]   ;;  %s368_s13 = int_to_ptr.hbm [resolvable:$true] %s367_s13 }
  0x20   : > { %s369_s18 = sshll.u32 %s2059_s14, 4  ;;  %s2391_s8 = sld [smem:[#allocation23_spill]]  ;;  %s370_s18 = int_to_ptr.vmem [resolvable:$true] %s369_s18 }
  0x21   : > { %1678 = dma.hbm_to_vmem [thread:$0]  (!%p2177_p6), %s368_s13, 384, %s370_s18, [#allocation6], %s2056_s19, %s2056_s19, %s2057_s20  }
  0x22   : > { %s435_s10 = sshll.u32 %s2373_s11, 4  ;;  %s2060_s12 = smov [#allocation10]   ;;  %s436_s10 = int_to_ptr.hbm [resolvable:$true] %s435_s10 }
  0x23   : > { %s406_s29 = sshll.u32 %s2060_s12, 4  ;;  %s2061_s30 = smov [#allocation13]   ;;  %s407_s29 = int_to_ptr.vmem [resolvable:$true] %s406_s29 }
  0x24   : > { %s437_s13 = sshll.u32 %s2061_s30, 4  ;;  %s1375_s17 = sadd.s32 4294967294, %s2052_s28   ;;  %s438_s13 = int_to_ptr.vmem [resolvable:$true] %s437_s13 }
  0x25   : > { %1690 = dma.hbm_to_vmem [thread:$0]  (!%p2177_p6), %s436_s10, 512, %s438_s13, [#allocation12], %s2056_s19, %s2056_s19, %s2057_s20  }
  0x26   : > { %s404_s21 = sshll.u32 %s2391_s8, 4  ;;  %s2207_s14 = sadd.s32 1, %s2052_s28   ;;  %s405_s21 = int_to_ptr.hbm [resolvable:$true] %s404_s21 }
  0x27   : > { %1684 = dma.hbm_to_vmem [thread:$0]  (!%p2177_p6), %s405_s21, 384, %s407_s29, [#allocation9], %s2056_s19, %s2056_s19, %s2057_s20  }
  0x28   : > { %s36_s18 = ssub.s32 %s2052_s28, %s2207_s14  ;;  %s39_s23 = sadd.s32 1, %s2048_s27 }
  0x29   : > { %p37_p7 = scmp.eq.s32.totalorder %s36_s18, 0  ;;  %p46_p8 = scmp.ne.s32.totalorder %s2048_s27, %s2044_s26 }
  0x2a   : > { %p47_p9 = scmp.eq.s32.totalorder %s2052_s28, 0  ;;  %p52_p10 = scmp.ne.s32.totalorder %s2044_s26, %s2040_s25 }
  0x2b   : > { %s2218_s24 = scalar_select %p37_p7, %s2048_s27, %s39_s23  }
  0x2c   : > { %p2220_p11 = por %p47_p9, %p46_p8  ;;  %p2226_p12 = por %p53_p1, %p52_p10 }
  0x2d   : > { %p328_p13 = scmp.eq.s32.totalorder %s2160_s15, 1  ;;  %p334_p0 = scmp.eq.s32.totalorder %s1375_s17, 1 }
  0x2e   : > { %p1705_p2 = scmp.lt.s32.totalorder %s2052_s28, 2  ;;  %s454_s19 = sand.u32 1, %s2048_s27  }
  0x2f   : > { %p2233_p5 = por %p328_p13, %p46_p8  ;;  %p2237_p6 = por %p334_p0, %p52_p10 }
  0x30   : > { %s1384_s4 = sshll.u32 %s454_s19, 4  ;;  %s1596_s10 = sshll.u32 %s2052_s28, 4 }
  0x31   : > { %s463_s30 = scalar_lea.hbm %s2362_s0, %s1596_s10  ;;  %s458_s13 = scalar_lea.vmem [#allocation2], %s1384_s4 }
  0x32   : > { %s466_s18 = sshll.u32 %s458_s13, 4  ;;  %s464_s23 = sshll.u32 %s463_s30, 4  ;;  %s467_s18 = int_to_ptr.vmem [resolvable:$true] %s466_s18  ;;  %s465_s23 = int_to_ptr.hbm [resolvable:$true] %s464_s23 }
  0x33   : > { %p2247_p7 = pnand %p1705_p2, %p2220_p11  ;;  %s455_s3 = scalar_lea.sflag [#allocation3], %s454_s19 }
  0x34   : > { %s1944_s8 = sshra.s32 %s465_s23, 4  ;;  %s1951_s12 = scalar_lea.hbm %s2362_s0, 32  ;;  %s1945_s8 = int_to_ptr.hbm [resolvable:$true] %s1944_s8 }
  0x35   : > { %s1946_s9 = scalar_lea.hbm %s1945_s8, 16  ;;  %p1948_p9 = pneg %p2247_p7 }
  0x36   : > { %p1947_p8 = scmp.ne.s32.totalorder %s1945_s8, %s1946_s9  ;;  %p1952_p11 = scmp.lt.s32.totalorder %s1945_s8, %s2362_s0 }
  0x37   : > { %p1953_p0 = scmp.lt.s32.totalorder %s1951_s12, %s1946_s9 }
  0x38   : > { %p1949_p10 = pnand %p1948_p9, %p1947_p8 }
  0x39   : > { %p1954_p2 = por %p1953_p0, %p1952_p11 }
  0x3a   : > { %p1950_p13 = pneg %p1949_p10 }
  0x3c   : > { %p1955_p4 = pnand %p1954_p2, %p1950_p13 }
  0x3e   : > { %1958 = shalt.err (!%p1955_p4)
}
  0x3f   : > { %s2062_s19 = smov 128   ;;  %s2063_s30 = smov 8  }
  0x40   : > { %1694 = dma.hbm_to_vmem [thread:$0]  (!%p2247_p7), %s465_s23, 256, %s467_s18, %s455_s3, %s2062_s19, %s2062_s19, %s2063_s30  }
  0x41   : > { %478 = sbr.rel (%p2165_p3) target bundleno = 709 (0x2c5), region = 72  ;;  %s2264_s13 = sand.u32 (!%p2165_p3), 1, %s2044_s26  }
  0x42   : > { %s1388_s8 = sshll.u32 (!%p2165_p3), %s2264_s13, 4  ;;  %s481_s9 = scalar_lea.sflag (!%p2165_p3), [#allocation3], %s2264_s13 }
  0x43   : > { %s484_s4 = scalar_lea.vmem (!%p2165_p3), [#allocation2], %s1388_s8 }
  0x46   : > { %2019 = dma.done.wait (%p2226_p12), %s481_s9, 256  }
  0x47   : > { %2021 = vsyncadd (%p2226_p12), %s481_s9, 4294967040 }
  0x48   : > { %2023 = dma.done.wait (%p53_p1), [#allocation6], 400  }
  0x49   : > { %2025 = vsyncadd (%p53_p1), [#allocation6], 4294966896 }
  0x4a   : > { %2027 = dma.done.wait (%p53_p1), [#allocation9], 1920  }
  0x4b   : > { %2029 = vsyncadd (%p53_p1), [#allocation9], 4294965376 }
  0x4c   : > { %2031 = dma.done.wait (%p53_p1), [#allocation12], 3584  }
  0x4d   : > { %2033 = vsyncadd (%p53_p1), [#allocation12], 4294963712  ;;  %v2286_v0 = vld [vmem:[%s484_s4] sm:$0xff]  ;;  %v2288_v1 = vld [vmem:[%s484_s4 + $0x8] sm:$0xff]  ;;  %vm587_vm2 = vcmask 130048   ;;  %vm673_vm3 = vcmask 523264  }
  0x4e   : > { %v1757_v2 = vld [vmem:[#allocation5] ss:$0 sm:$0xff]  ;;  %v1606_v6 = vld [vmem:[#allocation8 + $0x38] sm:$0xff]  ;;  %v1597_v15 = vld [vmem:[#allocation7] sm:$0xff]  ;;  %v1156_v63 = vpack.c.bf16 %v2288_v1, %v2286_v0  ;;  %s2397_s19 = sld [smem:[#allocation25_spill]]  ;;  %s1643_s3 = sshll.u32 %s2160_s15, 4 }
  0x4f   : > { %v1758_v3 = vld [vmem:[%s2364_s2] ss:$0 sm:$0xff]  ;;  %v565_v4 = vmul.f32 %v1757_v2, %v2286_v0  ;;  %v566_v5 = vmul.f32 %v1757_v2, %v2288_v1  ;;  %v1601_v7 = vld [vmem:[#allocation8 + $0x18] sm:$0xff]  ;;  %681 = vmatpush.bf16.msra.mxu2 %v1606_v6  ;;  %v2295_v16 = vld [vmem:[#allocation7 + $0x8] sm:$0xff]  ;;  %s2398_s4 = sld [smem:[#allocation26_spill]]  ;;  %s557_s17 = scalar_lea.vmem [#allocation14], %s1388_s8 }
  0x50   : > { %722 = vmatpush.bf16.msra.mxu3 %v1601_v7  ;;  %v1607_v17 = vld [vmem:[#allocation7 + $0x10] sm:$0xff]  ;;  %v1605_v18 = vld [vmem:[#allocation8 + $0x30] sm:$0xff]  ;;  %v1604_v20 = vld [vmem:[#allocation8 + $0x28] sm:$0xff]  ;;  %s2399_s18 = sld [smem:[#allocation27_spill]]  ;;  %s1242_s10 = sshll.u32 %s557_s17, 4  ;;  %s1243_s10 = int_to_ptr.vmem [resolvable:$true] %s1242_s10 }
  0x51   : > { %v571_v8 = vadd.f32 %v1758_v3, %v565_v4  ;;  %v572_v9 = vadd.f32 %v1758_v3, %v566_v5  ;;  %v1600_v19 = vld [vmem:[#allocation8 + $0x10] sm:$0xff]  ;;  %v1599_v21 = vld [vmem:[#allocation8 + $0x8] sm:$0xff]  ;;  %v1603_v22 = vld [vmem:[#allocation8 + $0x20] sm:$0xff]  ;;  %s1230_s15 = scalar_lea.sflag [#allocation4], %s2264_s13 }
  0x52   : > { %v1598_v23 = vld [vmem:[#allocation8] sm:$0xff]  ;;  %v1611_v24 = vld [vmem:[#allocation8 + $0x58] sm:$0xff]  ;;  %v1610_v25 = vld [vmem:[#allocation8 + $0x50] sm:$0xff] }
  0x53   : > { %vm573_vm0 = vcmp.ge.f32.partialorder %v571_v8, 0.0  ;;  %vm574_vm1 = vcmp.ge.f32.partialorder %v572_v9, 0.0  ;;  %v575_v10 = vmul.f32 0.2, %v571_v8  ;;  %v576_v11 = vmul.f32 0.2, %v572_v9  ;;  %682 = vmatpush.bf16.msra.mxu2 %v1605_v18 }
  0x54   : > { %723 = vmatpush.bf16.msra.mxu3 %v1600_v19  ;;  %v1609_v26 = vld [vmem:[#allocation8 + $0x48] sm:$0xff]  ;;  %v1608_v27 = vld [vmem:[#allocation8 + $0x40] sm:$0xff]  ;;  %v1629_v2 = vld [vmem:[#allocation11 + $0x78] sm:$0xff] }
  0x55   : > { %v577_v12 = vsel %vm573_vm0, %v571_v8, %v575_v10  ;;  %v578_v13 = vsel %vm574_vm1, %v572_v9, %v576_v11  ;;  %v1759_v40 = vld [vmem:[%s2367_s5] ss:$0 sm:$0xff]  ;;  %v1621_v62 = vld [vmem:[#allocation10 + $0x8] sm:$0xff]  ;;  %v1620_v3 = vld [vmem:[#allocation11 + $0x38] sm:$0xff] }
  0x56   : > { %v579_v14 = vpack.c.bf16 %v578_v13, %v577_v12  ;;  %v1760_v44 = vld [vmem:[%s2368_s6] ss:$0 sm:$0xff]  ;;  %v1628_v4 = vld [vmem:[#allocation11 + $0x70] sm:$0xff]  ;;  %v1638_v6 = vld [vmem:[#allocation11 + $0xb8] sm:$0xff]  ;;  %s1241_s23 = scalar_lea.hbm %s2399_s18, %s1643_s3  ;;  %s1994_s30 = scalar_lea.hbm %s2399_s18, 32 }
  0x57   : > { %683 = vmatpush.bf16.msra.mxu2 %v1604_v20  ;;  %v1761_v49 = vld [vmem:[%s2369_s7] ss:$0 sm:$0xff]  ;;  %v1619_v5 = vld [vmem:[#allocation11 + $0x30] sm:$0xff]  ;;  %v1626_v0 = vld [vmem:[#allocation11 + $0x60] sm:$0xff]  ;;  %s1244_s12 = sshll.u32 %s1241_s23, 4  ;;  %s1245_s12 = int_to_ptr.hbm [resolvable:$true] %s1244_s12 }
  0x58   : > { %598 = vmatpush.bf16.msra.mxu0 %v579_v14  ;;  %632 = vmatpush.bf16.msra.mxu1 %v579_v14  ;;  %v1612_v61 = vld [vmem:[#allocation10] sm:$0xff]  ;;  %v1617_v1 = vld [vmem:[#allocation11 + $0x20] sm:$0xff]  ;;  %v1630_v9 = vld [vmem:[#allocation10 + $0x10] sm:$0xff]  ;;  %s1988_s29 = sshra.s32 %s1245_s12, 4  ;;  %s1989_s29 = int_to_ptr.hbm [resolvable:$true] %s1988_s29 }
  0x59   : > { %724 = vmatpush.bf16.msra.mxu3 %v1599_v21  ;;  %v1627_v7 = vld [vmem:[#allocation11 + $0x68] sm:$0xff]  ;;  %v1625_v10 = vld [vmem:[#allocation11 + $0x58] sm:$0xff]  ;;  %v1624_v12 = vld [vmem:[#allocation11 + $0x50] sm:$0xff]  ;;  %s1990_s21 = scalar_lea.hbm %s1989_s29, 16  ;;  %p1995_p12 = scmp.lt.s32.totalorder %s1989_s29, %s2399_s18 }
  0x5a   : > { %v1618_v8 = vld [vmem:[#allocation11 + $0x28] sm:$0xff]  ;;  %v1616_v11 = vld [vmem:[#allocation11 + $0x18] sm:$0xff]  ;;  %v1615_v13 = vld [vmem:[#allocation11 + $0x10] sm:$0xff]  ;;  %p1991_p1 = scmp.ne.s32.totalorder %s1989_s29, %s1990_s21  ;;  %p1996_p7 = scmp.lt.s32.totalorder %s1994_s30, %s1990_s21 }
  0x5b   : > { %1400 = vmatmul.msk.bf16.vlgmr.msra.gmra.mxu0 %vm587_vm2, %v1597_v15  ;;  %1405 = vmatmul.msk.bf16.vlgmr.msra.gmra.mxu1 %vm587_vm2, %v2295_v16  ;;  %v1623_v15 = vld [vmem:[#allocation11 + $0x48] sm:$0xff]  ;;  %v1622_v19 = vld [vmem:[#allocation11 + $0x40] sm:$0xff] }
  0x5c   : > { %750 = vmatpush.bf16.msrb.mxu0 %v579_v14  ;;  %684 = vmatpush.bf16.msra.mxu2 %v1603_v22  ;;  %v1637_v14 = vld [vmem:[#allocation11 + $0xb0] sm:$0xff]  ;;  %v1636_v18 = vld [vmem:[#allocation11 + $0xa8] sm:$0xff]  ;;  %v1613_v20 = vld [vmem:[#allocation11] sm:$0xff]  ;;  %p1992_p3 = pnand %p1991_p1, %p2233_p5  ;;  %p1997_p8 = por %p1996_p7, %p1995_p12 }
  0x5d   : > { %725 = vmatpush.bf16.msra.mxu3 %v1598_v23  ;;  %798 = vmatpush.bf16.msrb.mxu1 %v1611_v24  ;;  %v1635_v21 = vld [vmem:[#allocation11 + $0xa0] sm:$0xff]  ;;  %v1634_v22 = vld [vmem:[#allocation11 + $0x98] sm:$0xff]  ;;  %v1632_v23 = vld [vmem:[#allocation11 + $0x88] sm:$0xff] }
  0x5e   : > { %v1631_v24 = vld [vmem:[#allocation11 + $0x80] sm:$0xff]  ;;  %p1993_p4 = pneg %p1992_p3 }
  0x60   : > { %967 = vmatpush.bf16.msra.mxu0 %v1629_v2  ;;  %p1998_p9 = pnand %p1997_p8, %p1993_p4 }
  0x61   : > { %799 = vmatpush.bf16.msrb.mxu1 %v1610_v25  ;;  %v1642_v25 = vld [vmem:[#allocation13 + $0x18] sm:$0xff] }
  0x64   : > { %968 = vmatpush.bf16.msra.mxu0 %v1628_v4 }
  0x65   : > { %800 = vmatpush.bf16.msrb.mxu1 %v1609_v26  ;;  %v1641_v26 = vld [vmem:[#allocation13 + $0x10] sm:$0xff] }
  0x68   : > { %969 = vmatpush.bf16.msra.mxu0 %v1627_v7 }
  0x69   : > { %801 = vmatpush.bf16.msrb.mxu1 %v1608_v27 }
  0x6b   : > { %1444 = vmatmul.msk.bf16.vlgmr.msrb.gmra.mxu0 %vm587_vm2, %v1607_v17  ;;  %v1614_v17 = vld [vmem:[#allocation11 + $0x8] sm:$0xff] }
  0x6c   : > { %970 = vmatpush.bf16.msra.mxu0 %v1626_v0 }
  0x6d   : > { %1029 = vmatpush.bf16.msra.mxu1 %v1620_v3 }
  0x70   : > { %971 = vmatpush.bf16.msra.mxu0 %v1625_v10 }
  0x71   : > { %1030 = vmatpush.bf16.msra.mxu1 %v1619_v5 }
  0x74   : > { %972 = vmatpush.bf16.msra.mxu0 %v1624_v12 }
  0x75   : > { %1031 = vmatpush.bf16.msra.mxu1 %v1618_v8 }
  0x78   : > { %973 = vmatpush.bf16.msra.mxu0 %v1623_v15 }
  0x79   : > { %1032 = vmatpush.bf16.msra.mxu1 %v1617_v1 }
  0x7c   : > { %974 = vmatpush.bf16.msra.mxu0 %v1622_v19 }
  0x7d   : > { %1033 = vmatpush.bf16.msra.mxu1 %v1616_v11 }
  0x80   : > { %1215 = vmatpush.bf16.msrb.mxu0 %v1642_v25 }
  0x81   : > { %1034 = vmatpush.bf16.msra.mxu1 %v1615_v13 }
  0x84   : > { %1216 = vmatpush.bf16.msrb.mxu0 %v1641_v26 }
  0x85   : > { %1035 = vmatpush.bf16.msra.mxu1 %v1614_v17 }
  0x89   : > { %1036 = vmatpush.bf16.msra.mxu1 %v1613_v20 }
  0xd8   : > { %v600_v28 = vpop.f32.mrf.mxu0  ;;  %v634_v29 = vpop.f32.mrf.mxu1 }
  0xe0   : > { %v602_v30 = vpop.f32.mrf.mxu0  ;;  %v636_v31 = vpop.f32.mrf.mxu1 }
  0xe1   : > { %v605_v32 = vpack.c.bf16 %v602_v30, %v600_v28  ;;  %v639_v33 = vpack.c.bf16 %v636_v31, %v634_v29  ;;  %v1640_v29 = vld [vmem:[#allocation13 + $0x8] sm:$0xff]  ;;  %v1639_v30 = vld [vmem:[#allocation13] sm:$0xff] }
  0xe2   : > { %1217 = vmatpush.bf16.msrb.mxu0 %v1640_v29 }
  0xe3   : > { %1422 = vmatmul.msk.bf16.vlgmr.msra.gmra.mxu2 %vm673_vm3, %v639_v33  ;;  %1439 = vmatmul.msk.bf16.vlgmr.msra.gmra.mxu3 %vm673_vm3, %v605_v32 }
  0xe6   : > { %1218 = vmatpush.bf16.msrb.mxu0 %v1639_v30 }
  0xe8   : > { %v752_v34 = vpop.f32.mrf.mxu0 }
  0xf0   : > { %v754_v35 = vpop.f32.mrf.mxu0 }
  0xf1   : > { %v757_v36 = vpack.c.bf16 %v754_v35, %v752_v34 }
  0xf3   : > { %1461 = vmatmul.msk.bf16.vlgmr.msrb.gmra.mxu1 %vm673_vm3, %v757_v36 }
 0x166   : > { %v686_v37 = vpop.f32.mrf.mxu2  ;;  %v727_v38 = vpop.f32.mrf.mxu3 }
 0x167   : > { %v728_v39 = vadd.f32 %v727_v38, %v686_v37 }
 0x16e   : > { %v688_v45 = vpop.f32.mrf.mxu2  ;;  %v729_v46 = vpop.f32.mrf.mxu3 }
 0x16f   : > { %v730_v47 = vadd.f32 %v729_v46, %v688_v45 }
 0x170   : > { %v803_v41 = vpop.f32.mrf.mxu1 }
 0x171   : > { %v808_v42 = vadd.f32 %v803_v41, %v728_v39 }
 0x173   : > { %v814_v43 = vadd.f32 %v1759_v40, %v808_v42 }
 0x175   : > { %v820_v48 = vmul.f32 %v1760_v44, %v814_v43 }
 0x177   : > { %v826_v52 = vadd.f32 %v1761_v49, %v820_v48  ;;  %v1763_v48 = vld [vmem:[%s2398_s4] ss:$0 sm:$0xff] }
 0x178   : > { %v805_v50 = vpop.f32.mrf.mxu1 }
 0x179   : > { %v809_v51 = vadd.f32 %v805_v50, %v730_v47  ;;  %v830_v56 = vmul.f32 0.2, %v826_v52  ;;  %vm828_vm4 = vcmp.ge.f32.partialorder %v826_v52, 0.0  ;;  %v1762_v47 = vld [vmem:[%s2397_s19] ss:$0 sm:$0xff] }
 0x17b   : > { %v815_v53 = vadd.f32 %v1759_v40, %v809_v51  ;;  %v832_v58 = vsel %vm828_vm4, %v826_v52, %v830_v56 }
 0x17d   : > { %v821_v54 = vmul.f32 %v1760_v44, %v815_v53 }
 0x17f   : > { %v827_v55 = vadd.f32 %v1761_v49, %v821_v54 }
 0x181   : > { %vm829_vm5 = vcmp.ge.f32.partialorder %v827_v55, 0.0  ;;  %v831_v57 = vmul.f32 0.2, %v827_v55 }
 0x183   : > { %v833_v59 = vsel %vm829_vm5, %v827_v55, %v831_v57 }
 0x184   : > { %v834_v60 = vpack.c.bf16 %v833_v59, %v832_v58 }
 0x186   : > { %852 = vmatpush.bf16.msrb.mxu2 %v834_v60  ;;  %894 = vmatpush.bf16.msrb.mxu3 %v834_v60 }
 0x189   : > { %1466 = vmatmul.msk.bf16.vlgmr.msrb.gmra.mxu2 %vm587_vm2, %v1612_v61  ;;  %1471 = vmatmul.msk.bf16.vlgmr.msrb.gmra.mxu3 %vm587_vm2, %v1621_v62 }
 0x18a   : > { %1061 = vmatpush.bf16.msra.mxu2 %v834_v60  ;;  %1134 = vmatpush.bf16.msra.mxu3 %v1638_v6 }
 0x18e   : > { %1164 = vmatpush.bf16.msrb.mxu2 %v1156_v63  ;;  %1135 = vmatpush.bf16.msra.mxu3 %v1637_v14 }
 0x192   : > { %1136 = vmatpush.bf16.msra.mxu3 %v1636_v18 }
 0x196   : > { %1137 = vmatpush.bf16.msra.mxu3 %v1635_v21 }
 0x199   : > { %1540 = vmatmul.msk.bf16.vlgmr.msra.gmra.mxu2 %vm587_vm2, %v1630_v9 }
 0x19a   : > { %1138 = vmatpush.bf16.msra.mxu3 %v1634_v22 }
 0x1a9   : > { %1573 = vmatmul.msk.bf16.vlgmr.msrb.gmra.mxu2 %vm587_vm2, %v2295_v16  ;;  %v1633_v16 = vld [vmem:[#allocation11 + $0x90] sm:$0xff] }
 0x1aa   : > { %1139 = vmatpush.bf16.msra.mxu3 %v1633_v16 }
 0x1ae   : > { %1140 = vmatpush.bf16.msra.mxu3 %v1632_v23 }
 0x1b2   : > { %1141 = vmatpush.bf16.msra.mxu3 %v1631_v24 }
 0x20c   : > { %v854_v27 = vpop.f32.mrf.mxu2  ;;  %v896_v28 = vpop.f32.mrf.mxu3 }
 0x214   : > { %v856_v31 = vpop.f32.mrf.mxu2  ;;  %v898_v32 = vpop.f32.mrf.mxu3 }
 0x215   : > { %v859_v33 = vpack.c.bf16 %v856_v31, %v854_v27  ;;  %v901_v34 = vpack.c.bf16 %v898_v32, %v896_v28 }
 0x217   : > { %975 = vmatmul.bf16.vlgmr.msra.gmra.mxu0 %v901_v34  ;;  %1037 = vmatmul.bf16.vlgmr.msra.gmra.mxu1 %v859_v33 }
 0x21c   : > { %v1063_v35 = vpop.f32.mrf.mxu2 }
 0x224   : > { %v1065_v36 = vpop.f32.mrf.mxu2 }
 0x225   : > { %v1068_v37 = vpack.c.bf16 %v1065_v36, %v1063_v35 }
 0x227   : > { %1142 = vmatmul.bf16.vlgmr.msra.gmra.mxu3 %v1068_v37 }
 0x22c   : > { %v1166_v38 = vpop.f32.mrf.mxu2 }
 0x234   : > { %v1168_v39 = vpop.f32.mrf.mxu2 }
 0x235   : > { %v1171_v40 = vpack.c.bf16 %v1168_v39, %v1166_v38 }
 0x237   : > { %1590 = vmatmul.msk.bf16.vlgmr.msrb.gmra.mxu0 %vm673_vm3, %v1171_v40 }
 0x294   : > { %v976_v41 = vpop.f32.mrf.mxu0  ;;  %v1038_v42 = vpop.f32.mrf.mxu1 }
 0x295   : > { %v1039_v45 = vadd.f32 %v1038_v42, %v976_v41 }
 0x29c   : > { %v978_v43 = vpop.f32.mrf.mxu0  ;;  %v1040_v49 = vpop.f32.mrf.mxu1 }
 0x29d   : > { %v1041_v54 = vadd.f32 %v1040_v49, %v978_v43 }
 0x2aa   : > { %v1143_v44 = vpop.f32.mrf.mxu3 }
 0x2ab   : > { %v1148_v46 = vadd.f32 %v1143_v44, %v1039_v45 }
 0x2ad   : > { %v1154_v51 = vadd.f32 %v1762_v47, %v1148_v46 }
 0x2b2   : > { %v1145_v53 = vpop.f32.mrf.mxu3 }
 0x2b3   : > { %v1149_v56 = vadd.f32 %v1145_v53, %v1041_v54 }
 0x2b4   : > { %v1220_v50 = vpop.f32.mrf.mxu0 }
 0x2b5   : > { %v1221_v52 = vadd.f32 %v1763_v48, %v1220_v50  ;;  %v1155_v58 = vadd.f32 %v1762_v47, %v1149_v56 }
 0x2b7   : > { %v1225_v55 = vadd.f32 %v1221_v52, %v1154_v51 }
 0x2b9   : > { %1227 = vst [vmem:[%s557_s17] sm:$0xff] %v1225_v55 }
 0x2bc   : > { %v1222_v57 = vpop.f32.mrf.mxu0 }
 0x2bd   : > { %v1223_v59 = vadd.f32 %v1763_v48, %v1222_v57 }
 0x2bf   : > { %v1226_v60 = vadd.f32 %v1223_v59, %v1155_v58 }
 0x2c1   : > { %1228 = vst [vmem:[%s557_s17 + $0x8] sm:$0xff] %v1226_v60 }
 0x2c2   : > { %2001 = shalt.err (!%p1998_p9)
}
 0x2c3   : > { %s2064_s13 = smov 128   ;;  %s2065_s3 = smov 8  }
 0x2c4   : > { %1670 = dma.vmem_to_hbm [thread:$0]  (%p2233_p5), %s1243_s10, 256, %s1245_s12, %s1230_s15, %s2064_s13, %s2064_s13, %s2065_s3  }
 0x2c5 PF: > { %s1259_s16 = sand.u32 1, %s2040_s25   ;;  %p2400_p10 = scmp.ge.s32.totalorder %s2052_s28, 2 }
 0x2c6   : > { %s1260_s22 = scalar_lea.sflag [#allocation4], %s1259_s16 }
 0x2c7   : > { %p1696_p13 = pnand %p2400_p10, %p2237_p6 }
 0x2c9   : > { %p1697_p11 = pneg %p1696_p13 }
 0x2cb   : > { %2035 = dma.done.wait (%p1697_p11), %s1260_s22, 256  }
 0x2cc   : > { %2037 = vsyncadd (%p1697_p11), %s1260_s22, 4294967040  ;;  %p29_p0 = scmp.ge.s32.totalorder %s2207_s14, 4   ;;  %s2401_s25 = smov %s2044_s26 }
 0x2cd   : > { %s2402_s26 = smov %s2048_s27  ;;  %s2403_s27 = smov %s2218_s24 }
 0x2ce   : > { %s2404_s28 = smov %s2207_s14  ;;  %31 = sbr.rel (!%p29_p0) target bundleno = 17 (0x11), region = 149 }
 0x2d3   :  { %1266 = vsyncpa [#allocation3], 1 }
 0x2d4   :  { %1268 = vsyncpa [#allocation3 + $0x1], 1 }
 0x2d5   :  { %1269 = vsyncpa [#allocation6], 1 }
 0x2d6   :  { %1270 = vsyncpa [#allocation9], 1 }
 0x2d7   :  { %1271 = vsyncpa [#allocation12], 1 }
 0x2d8   :  { %1272 = vsyncpa [#allocation4], 1 }
 0x2d9   :  { %1274 = vsyncpa [#allocation4 + $0x1], 1 }

</bundles_post_ra>
